<compile_context>
chip_gen: v7x
topology: tpu7x:2x2x1
jax: 0.10.0
libtpu: 0.0.40
codegen_flags: <defaults>
</compile_context>

<pallas_src>
import math

import jax
import jax.numpy as jnp
from jax.experimental import pallas as pl
from jax.experimental.pallas import tpu as pltpu


def _round_up(x: int, m: int) -> int:
    return ((x + m - 1) // m) * m


def _vmem_capacity_bytes() -> int:
    try:
        return int(pltpu.get_tpu_info().vmem_capacity_bytes)
    except Exception:
        # Conservative fallback: v7x per-TensorCore VMEM.
        return 64 * 1024 * 1024


# ----------------------------- kernels --------------------------------------
# Grid = (M-blocks, N-blocks, K-blocks); reduction axis (k) is last.

def _mm_f32out_bias_kernel(x_ref, w_ref, b_ref, o_ref):
    # f32 output: o_ref itself is the resident accumulator (index map ignores k).
    @pl.when(pl.program_id(2) == 0)
    def _():
        o_ref[...] = jnp.broadcast_to(b_ref[...], o_ref.shape)

    o_ref[...] += jnp.dot(x_ref[...], w_ref[...],
                          preferred_element_type=jnp.float32)


def _mm_f32out_kernel(x_ref, w_ref, o_ref):
    @pl.when(pl.program_id(2) == 0)
    def _():
        o_ref[...] = jnp.zeros_like(o_ref)

    o_ref[...] += jnp.dot(x_ref[...], w_ref[...],
                          preferred_element_type=jnp.float32)


def _mm_acc_bias_kernel(x_ref, w_ref, b_ref, o_ref, acc_ref):
    # Non-f32 output (e.g. bf16): keep an f32 accumulator scratch.
    @pl.when(pl.program_id(2) == 0)
    def _():
        acc_ref[...] = jnp.zeros_like(acc_ref)

    acc_ref[...] += jnp.dot(x_ref[...], w_ref[...],
                            preferred_element_type=jnp.float32)

    @pl.when(pl.program_id(2) == pl.num_programs(2) - 1)
    def _():
        o_ref[...] = (acc_ref[...] + b_ref[...]).astype(o_ref.dtype)


def _mm_acc_kernel(x_ref, w_ref, o_ref, acc_ref):
    @pl.when(pl.program_id(2) == 0)
    def _():
        acc_ref[...] = jnp.zeros_like(acc_ref)

    acc_ref[...] += jnp.dot(x_ref[...], w_ref[...],
                            preferred_element_type=jnp.float32)

    @pl.when(pl.program_id(2) == pl.num_programs(2) - 1)
    def _():
        o_ref[...] = acc_ref[...].astype(o_ref.dtype)


# --------------------------- tile planning ----------------------------------

def _plan_tiles(K, N, x_itemsize, w_itemsize, out_itemsize, needs_acc, *,
                tm_max=512, tn_max=512, tk_max=2048):
    """Pick (tm_budget, tn, tk, vmem_limit_bytes) from the chip's VMEM size."""
    vmem_cap = _vmem_capacity_bytes()
    budget = int(vmem_cap * 0.70)  # ~48 MiB on v7x, ~90 MiB on v5e/v6e

    sub = 16 if x_itemsize <= 2 else 8
    tn = min(tn_max, _round_up(N, 128))
    tk = min(tk_max, _round_up(K, 128))
    tm = tm_max

    def usage(tm_, tn_, tk_):
        u = 2 * (tm_ * tk_ * x_itemsize     # double-buffered x tile
                 + tk_ * tn_ * w_itemsize   # double-buffered W tile
                 + tm_ * tn_ * out_itemsize)  # double-buffered out tile
        if needs_acc:
            u += tm_ * tn_ * 4              # f32 accumulator scratch
        u += 2 * tn_ * 4                    # bias block (f32)
        return u

    while usage(tm, tn, tk) > budget:
        if tk > 512:
            tk = max(512, _round_up(tk // 2, 128))
        elif tn > 256:
            tn = max(256, _round_up(tn // 2, 128))
        elif tm > 256:
            tm = max(256, _round_up(tm // 2, sub))
        elif tk > 128:
            tk = max(128, _round_up(tk // 2, 128))
        elif tn > 128:
            tn = max(128, _round_up(tn // 2, 128))
        elif tm > sub:
            tm = max(sub, _round_up(tm // 2, sub))
        else:
            break

    vmem_limit = int(usage(tm, tn, tk) * 1.5) + (4 << 20)
    vmem_limit = max(vmem_limit, 32 << 20)
    vmem_limit = min(vmem_limit, vmem_cap)
    return tm, tn, tk, vmem_limit


def _choose_tm(M, tm_budget, sub):
    """Pick tm <= tm_budget minimizing M padding (wasted MXU rows)."""
    if M <= tm_budget:
        return _round_up(M, sub)
    best, best_waste = tm_budget, _round_up(M, tm_budget) - M
    c = tm_budget
    floor = max(sub, tm_budget // 4)
    while c >= floor:
        waste = _round_up(M, c) - M
        if waste < best_waste:
            best, best_waste = c, waste
        if waste == 0:
            break
        c -= sub
    return best


# ----------------------------- core call ------------------------------------

def _linear_call(x2d, w_t, bias_row, out_dtype, tm, tn, tk, vmem_limit):
    """x2d: (M, K) unpadded; w_t: (Kp, Np) pre-transposed+padded; bias_row: (1, Np) f32 or None."""
    M, K = x2d.shape
    Kp, Np = w_t.shape
    Mp = _round_up(M, tm)

    if Mp != M or Kp != K:
        # Zero padding along K contributes nothing to the dot.
        x2d = jnp.pad(x2d, ((0, Mp - M), (0, Kp - K)))

    grid = (Mp // tm, Np // tn, Kp // tk)
    out_dt = jnp.dtype(out_dtype)
    direct_f32 = out_dt == jnp.dtype(jnp.float32)

    x_spec = pl.BlockSpec((tm, tk), lambda i, j, k: (i, k))
    w_spec = pl.BlockSpec((tk, tn), lambda i, j, k: (k, j))
    o_spec = pl.BlockSpec((tm, tn), lambda i, j, k: (i, j))
    scratch = [] if direct_f32 else [pltpu.VMEM((tm, tn), jnp.float32)]

    x_isz = jnp.dtype(x2d.dtype).itemsize
    w_isz = jnp.dtype(w_t.dtype).itemsize
    o_isz = out_dt.itemsize
    bytes_accessed = (Mp * Kp * x_isz) * grid[1] \
        + (Kp * Np * w_isz) * grid[0] \
        + Mp * Np * o_isz
    if bias_row is not None:
        bytes_accessed += Np * 4 * grid[0]
    cost = pl.CostEstimate(flops=2 * Mp * Np * Kp, transcendentals=0,
                           bytes_accessed=int(bytes_accessed))

    compiler_params = pltpu.CompilerParams(
        dimension_semantics=("parallel", "parallel", "arbitrary"),
        vmem_limit_bytes=int(vmem_limit),
    )
    out_shape = jax.ShapeDtypeStruct((Mp, Np), out_dt)

    if bias_row is not None:
        b_spec = pl.BlockSpec((1, tn), lambda i, j, k: (0, j))
        kernel = _mm_f32out_bias_kernel if direct_f32 else _mm_acc_bias_kernel
        in_specs = [x_spec, w_spec, b_spec]
        operands = (x2d, w_t, bias_row)
    else:
        kernel = _mm_f32out_kernel if direct_f32 else _mm_acc_kernel
        in_specs = [x_spec, w_spec]
        operands = (x2d, w_t)

    return pl.pallas_call(
        kernel,
        out_shape=out_shape,
        grid_spec=pltpu.PrefetchScalarGridSpec(
            num_scalar_prefetch=0,
            grid=grid,
            in_specs=in_specs,
            out_specs=o_spec,
            scratch_shapes=scratch,
        ),
        compiler_params=compiler_params,
        cost_estimate=cost,
    )(*operands)


# ----------------------------- module ---------------------------------------

class FastLinear:
    """Pallas TPU equivalent of FastLinear.forward: F.linear(x, weight, bias).

    The (K, N)-layout (transposed) weight and the f32 bias row are padded and
    cached once at construction time, so every forward pass feeds the MXU a
    lane-dense RHS with no per-call transpose/pad HBM passes.
    """

    def __init__(self, weight, bias=None, *, tm_max=512, tn_max=512, tk_max=2048):
        self.out_features, self.in_features = weight.shape
        w_isz = jnp.dtype(weight.dtype).itemsize
        needs_acc = jnp.dtype(weight.dtype) != jnp.dtype(jnp.float32)
        self._sub = 16 if w_isz <= 2 else 8

        self._tm_budget, self._tn, self._tk, self._vmem_limit = _plan_tiles(
            self.in_features, self.out_features,
            w_isz, w_isz, w_isz, needs_acc,
            tm_max=tm_max, tn_max=tn_max, tk_max=tk_max)

        Kp = _round_up(self.in_features, self._tk)
        Np = _round_up(self.out_features, self._tn)

        w_t = weight.T  # (K, N) — one-time layout change, cached
        if (Kp, Np) != (self.in_features, self.out_features):
            w_t = jnp.pad(w_t, ((0, Kp - self.in_features),
                                (0, Np - self.out_features)))
        self.w_t = w_t

        if bias is not None:
            b = bias.astype(jnp.float32).reshape(1, self.out_features)
            if Np != self.out_features:
                b = jnp.pad(b, ((0, 0), (0, Np - self.out_features)))
            self.bias = b
        else:
            self.bias = None

    def __call__(self, x):
        assert x.shape[-1] == self.in_features
        lead = x.shape[:-1]
        M = math.prod(lead) if lead else 1
        x2d = x.reshape(M, self.in_features)
        out_dtype = x.dtype

        tm = _choose_tm(M, self._tm_budget, self._sub)
        tn = self._tn
        Mp = _round_up(M, tm)
        Np = self.w_t.shape[1]

        # Keep >= 2 blocks on a "parallel" axis so v7x megacore can shard.
        if (Mp // tm) * (Np // tn) == 1 and tn % 256 == 0:
            tn //= 2

        out2d = _linear_call(x2d, self.w_t, self.bias, out_dtype,
                             tm, tn, self._tk, self._vmem_limit)
        if out2d.shape != (M, self.out_features):
            out2d = out2d[:M, :self.out_features]
        return out2d.reshape(*lead, self.out_features)


def fast_linear(x, weight, bias=None):
    """Functional one-shot wrapper (prefer the FastLinear class: it caches the
    transposed/padded weight across calls)."""
    return FastLinear(weight, bias)(x)


# ------------------------------ test ----------------------------------------

if __name__ == "__main__":
    key = jax.random.PRNGKey(0)
    k_x, k_w, k_b, k_x3, k_w3, k_x4, k_w4, k_b4 = jax.random.split(key, 8)

    # --- Small shapes consistent with the module: batch=2, seq=8, hidden=32, out=64
    batch, seq, hidden, out_dim = 2, 8, 32, 64
    x = jax.random.normal(k_x, (batch, seq, hidden), dtype=jnp.float32)
    weight = jax.random.normal(k_w, (out_dim, hidden), dtype=jnp.float32) * 0.02
    bias = jax.random.normal(k_b, (out_dim,), dtype=jnp.float32) * 0.01

    layer = FastLinear(weight, bias)
    y = jax.block_until_ready(layer(x))
    y_ref = x @ weight.T + bias
    assert y.shape == (batch, seq, out_dim)
    assert jnp.allclose(y, y_ref, atol=1e-3, rtol=1e-3)

    # --- Without bias
    layer_nb = FastLinear(weight, None)
    y_nb = jax.block_until_ready(layer_nb(x))
    assert jnp.allclose(y_nb, x @ weight.T, atol=1e-3, rtol=1e-3)

    # --- Multi-block (M, N, K) grid: force small tiles to exercise the
    #     resident-accumulator reduction and parallel M/N axes.
    M3, K3, N3 = 64, 256, 256
    x3 = jax.random.normal(k_x3, (M3, K3), dtype=jnp.float32)
    w3 = jax.random.normal(k_w3, (N3, K3), dtype=jnp.float32) * 0.05
    layer3 = FastLinear(w3, None, tm_max=32, tn_max=128, tk_max=128)
    y3 = jax.block_until_ready(layer3(x3))
    assert jnp.allclose(y3, x3 @ w3.T, atol=1e-2, rtol=1e-3)

    # --- bf16 path (f32 scratch accumulator + f32 bias, bf16 output)
    M4, K4, N4 = 32, 256, 128
    x4 = jax.random.normal(k_x4, (M4, K4), dtype=jnp.bfloat16)
    w4 = (jax.random.normal(k_w4, (N4, K4), dtype=jnp.float32) * 0.02).astype(jnp.bfloat16)
    b4 = jax.random.normal(k_b4, (N4,), dtype=jnp.float32) * 0.01
    layer4 = FastLinear(w4, b4)
    y4 = jax.block_until_ready(layer4(x4))
    ref4 = x4.astype(jnp.float32) @ w4.T.astype(jnp.float32) + b4
    assert jnp.allclose(y4.astype(jnp.float32), ref4, atol=3e-2, rtol=3e-2)

    print("KERNEL_OK")
</pallas_src>

<mosaic_0001>
module attributes {stable_mosaic.version = 11 : i64} {
  func.func @_mm_f32out_bias_kernel(%arg0: i32, %arg1: i32, %arg2: i32, %arg3: memref<16x128xf32, #tpu.memory_space<vmem>>, %arg4: memref<128x128xf32, #tpu.memory_space<vmem>>, %arg5: memref<1x128xf32, #tpu.memory_space<vmem>>, %arg6: memref<16x128xf32, #tpu.memory_space<vmem>>) attributes {dimension_semantics = [#tpu.dimension_semantics<parallel>, #tpu.dimension_semantics<parallel>, #tpu.dimension_semantics<arbitrary>], iteration_bounds = array<i64: 1, 1, 1>, scalar_prefetch = 0 : i64, scratch_operands = 0 : i64, tpu.core_type = #tpu.core_type<tc>, window_params = [{transform_indices = @transform_0, window_bounds = array<i64: 16, 128>}, {transform_indices = @transform_1, window_bounds = array<i64: 128, 128>}, {transform_indices = @transform_2, window_bounds = array<i64: 1, 128>}, {transform_indices = @transform_3, window_bounds = array<i64: 16, 128>}]} {
    %c0_i32 = arith.constant 0 : i32
    %0 = arith.cmpi eq, %arg2, %c0_i32 : i32
    %1 = arith.extui %0 : i1 to i32
    %c0_i32_0 = arith.constant 0 : i32
    %2 = arith.cmpi ne, %1, %c0_i32_0 : i32
    scf.if %2 {
      %c0_8 = arith.constant 0 : index
      %c0_9 = arith.constant 0 : index
      %9 = vector.load %arg5[%c0_8, %c0_9] : memref<1x128xf32, #tpu.memory_space<vmem>>, vector<1x128xf32>
      %10 = vector.shape_cast %9 : vector<1x128xf32> to vector<1x128xf32>
      %11 = vector.broadcast %10 : vector<1x128xf32> to vector<16x128xf32>
      %c0_10 = arith.constant 0 : index
      %c0_11 = arith.constant 0 : index
      %12 = vector.load %arg6[%c0_10, %c0_11] : memref<16x128xf32, #tpu.memory_space<vmem>>, vector<16x128xf32>
      tpu.vector_store %arg6[%c0_10, %c0_11], %11 {strides = array<i32>} : memref<16x128xf32, #tpu.memory_space<vmem>>, vector<16x128xf32>,
    } else {
    }
    %c0 = arith.constant 0 : index
    %c0_1 = arith.constant 0 : index
    %3 = vector.load %arg6[%c0, %c0_1] : memref<16x128xf32, #tpu.memory_space<vmem>>, vector<16x128xf32>
    %c0_2 = arith.constant 0 : index
    %c0_3 = arith.constant 0 : index
    %4 = vector.load %arg3[%c0_2, %c0_3] : memref<16x128xf32, #tpu.memory_space<vmem>>, vector<16x128xf32>
    %c0_4 = arith.constant 0 : index
    %c0_5 = arith.constant 0 : index
    %5 = vector.load %arg4[%c0_4, %c0_5] : memref<128x128xf32, #tpu.memory_space<vmem>>, vector<128x128xf32>
    %cst = arith.constant dense<0.000000e+00> : vector<16x128xf32>
    %6 = tpu.matmul %4, %5, %cst {dimension_numbers = #tpu.dot_dimension_numbers<[1], [0], [0], [1], [0, 0, 1, 1], [], []>} : vector<16x128xf32>, vector<128x128xf32>, vector<16x128xf32> -> vector<16x128xf32>
    %7 = arith.addf %3, %6 : vector<16x128xf32>
    %c0_6 = arith.constant 0 : index
    %c0_7 = arith.constant 0 : index
    %8 = vector.load %arg6[%c0_6, %c0_7] : memref<16x128xf32, #tpu.memory_space<vmem>>, vector<16x128xf32>
    tpu.vector_store %arg6[%c0_6, %c0_7], %7 {strides = array<i32>} : memref<16x128xf32, #tpu.memory_space<vmem>>, vector<16x128xf32>,
    return
  }
  func.func @transform_0(%arg0: i32, %arg1: i32, %arg2: i32) -> (i32, i32) {
    %c0_i32 = arith.constant 0 : i32
    return %arg0, %arg2 : i32, i32
  }
  func.func @transform_1(%arg0: i32, %arg1: i32, %arg2: i32) -> (i32, i32) {
    %c0_i32 = arith.constant 0 : i32
    return %arg2, %arg1 : i32, i32
  }
  func.func @transform_2(%arg0: i32, %arg1: i32, %arg2: i32) -> (i32, i32) {
    %c0_i32 = arith.constant 0 : i32
    %c0_i32_0 = arith.constant 0 : i32
    return %c0_i32, %arg1 : i32, i32
  }
  func.func @transform_3(%arg0: i32, %arg1: i32, %arg2: i32) -> (i32, i32) {
    %c0_i32 = arith.constant 0 : i32
    return %arg0, %arg1 : i32, i32
  }
}

</mosaic_0001>

<bundles_post_ra>
// kernel: tpu_custom_call.1
= control target key start
LH: loop header
LB: loop body
LE: loop exit
PB: predicated region body
PF: predicated region fallthrough
CT: control target
= control target key end

     0   :  { %8 = vsyncpa [#allocation3], 0  ;;  %s409_s0 = inlined_call_operand.hbm [shape: f32[16,128], index: 0, kind: input, shape index: {}]   ;;  %s410_s1 = inlined_call_operand.hbm [shape: f32[128,128], index: 1, kind: input, shape index: {}]   ;;  %s411_s2 = inlined_call_operand.vmem [shape: f32[1,128], index: 2, kind: input, shape index: {}]   ;;  %s412_s3 = inlined_call_operand.hbm [shape: f32[16,128], index: 3, kind: output, shape index: {}]  }
   0x1   :  { %9 = vsyncpa [#allocation6], 0 }
   0x2   :  { %10 = vsyncpa [#allocation4], 0  ;;  %s336_s12 = smov [#allocation2]   ;;  %s264_s16 = scalar_lea.hbm %s409_s0, 256 }
   0x3   :  { %s16_s13 = sshll.u32 %s336_s12, 4  ;;  %p265_p0 = scmp.ne.s32.totalorder %s409_s0, %s264_s16  ;;  %s17_s13 = int_to_ptr.vmem [resolvable:$true] %s16_s13 }
   0x4   :  { %p268_p1 = scmp.lt.u32.totalorder %s264_s16, %s409_s0 }
   0x6   :  { %p270_p2 = pnand %p268_p1, %p265_p0 }
   0x8   :  { %273 = shalt.err (!%p270_p2)
}
   0x9   :  { %s274_s21 = scalar_lea.vmem %s17_s13, 256  ;;  %p279_p4 = scmp.lt.s32.totalorder %s17_s13, %s17_s13 }
   0xa   :  { %p275_p3 = scmp.ne.s32.totalorder %s17_s13, %s274_s21  ;;  %p280_p5 = scmp.lt.s32.totalorder %s274_s21, %s274_s21 }
   0xc   :  { %p281_p6 = por %p280_p5, %p279_p4 }
   0xe   :  { %p282_p7 = pnand %p281_p6, %p275_p3 }
  0x10   :  { %285 = shalt.err (!%p282_p7)
}
  0x11   :  { %s337_s22 = smov 128   ;;  %s338_s23 = smov 8  }
  0x12   :  { %22 = dma.hbm_to_vmem [thread:$0]  %s409_s0, 256, %s17_s13, [#allocation3], %s337_s22, %s337_s22, %s338_s23  }
  0x13   :  { %s339_s26 = smov [#allocation5]   ;;  %s286_s30 = scalar_lea.hbm %s410_s1, 2048 }
  0x14   :  { %s28_s27 = sshll.u32 %s339_s26, 4  ;;  %p287_p8 = scmp.ne.s32.totalorder %s410_s1, %s286_s30  ;;  %s29_s27 = int_to_ptr.vmem [resolvable:$true] %s28_s27 }
  0x15   :  { %p290_p9 = scmp.lt.u32.totalorder %s286_s30, %s410_s1 }
  0x17   :  { %p292_p10 = pnand %p290_p9, %p287_p8 }
  0x19   :  { %295 = shalt.err (!%p292_p10)
}
  0x1a   :  { %s296_s8 = scalar_lea.vmem %s29_s27, 2048  ;;  %p301_p12 = scmp.lt.s32.totalorder %s29_s27, %s29_s27 }
  0x1b   :  { %p297_p11 = scmp.ne.s32.totalorder %s29_s27, %s296_s8  ;;  %p302_p13 = scmp.lt.s32.totalorder %s296_s8, %s296_s8 }
  0x1d   :  { %p303_p0 = por %p302_p13, %p301_p12 }
  0x1f   :  { %p304_p1 = pnand %p303_p0, %p297_p11 }
  0x21   :  { %307 = shalt.err (!%p304_p1)
}
  0x22   :  { %34 = dma.hbm_to_vmem [thread:$0]  %s410_s1, 2048, %s29_s27, [#allocation6], %s337_s22, %s337_s22, %s338_s23  }
  0x23   :  { %330 = dma.done.wait [#allocation3], 256  }
  0x24   :  { %331 = vsyncadd [#allocation3], 4294967040 }
  0x25   :  { %332 = dma.done.wait [#allocation6], 2048  }
  0x26   :  { %333 = vsyncadd [#allocation6], 4294965248  ;;  %v60_v0 = vld [vmem:[#allocation5] sm:$0xff]  ;;  %v61_v1 = vld [vmem:[#allocation5 + $0x8] sm:$0xff]  ;;  %s340_s11 = smov [#allocation7]  }
  0x27   :  { %v62_v2 = vld [vmem:[#allocation5 + $0x10] sm:$0xff]  ;;  %v227_v3 = vpack.c.bf16 %v61_v1, %v60_v0  ;;  %v63_v4 = vld [vmem:[#allocation5 + $0x18] sm:$0xff]  ;;  %v64_v6 = vld [vmem:[#allocation5 + $0x20] sm:$0xff]  ;;  %s160_s12 = sshll.u32 %s340_s11, 4  ;;  %s161_s12 = int_to_ptr.vmem [resolvable:$true] %s160_s12 }
  0x28   :  { %v231_v5 = vpack.c.bf16 %v63_v4, %v62_v2  ;;  %v65_v7 = vld [vmem:[#allocation5 + $0x28] sm:$0xff]  ;;  %v58_v9 = vld [vmem:[#allocation2] sm:$0xff]  ;;  %v67_v11 = vld [vmem:[#allocation5 + $0x38] sm:$0xff]  ;;  %s308_s13 = scalar_lea.vmem %s161_s12, 256  ;;  %p313_p3 = scmp.lt.s32.totalorder %s161_s12, %s161_s12 }
  0x29   :  { %228 = vmatprep.subr.bf16.mxu0 %v227_v3  ;;  %v235_v8 = vpack.c.bf16 %v65_v7, %v64_v6  ;;  %v66_v10 = vld [vmem:[#allocation5 + $0x30] sm:$0xff]  ;;  %224 = vmatprep.mubr.f32.mxu0 %v58_v9  ;;  %v68_v13 = vld [vmem:[#allocation5 + $0x40] sm:$0xff]  ;;  %v69_v14 = vld [vmem:[#allocation5 + $0x48] sm:$0xff]  ;;  %p309_p2 = scmp.ne.s32.totalorder %s161_s12, %s308_s13  ;;  %p314_p4 = scmp.lt.s32.totalorder %s308_s13, %s308_s13 }
  0x2a   :  { %230 = vmatpush3.bf16.msra.mxu0 %v227_v3  ;;  %v239_v12 = vpack.c.bf16 %v67_v11, %v66_v10  ;;  %v243_v15 = vpack.c.bf16 %v69_v14, %v68_v13  ;;  %v70_v16 = vld [vmem:[#allocation5 + $0x50] sm:$0xff]  ;;  %v71_v17 = vld [vmem:[#allocation5 + $0x58] sm:$0xff]  ;;  %v72_v19 = vld [vmem:[#allocation5 + $0x60] sm:$0xff] }
  0x2b   :  { %232 = vmatprep.subr.bf16.mxu0 %v231_v5  ;;  %v247_v18 = vpack.c.bf16 %v71_v17, %v70_v16  ;;  %v73_v20 = vld [vmem:[#allocation5 + $0x68] sm:$0xff]  ;;  %v74_v22 = vld [vmem:[#allocation5 + $0x70] sm:$0xff]  ;;  %v75_v23 = vld [vmem:[#allocation5 + $0x78] sm:$0xff]  ;;  %p315_p5 = por %p314_p4, %p313_p3 }
  0x2c   :  { %v251_v21 = vpack.c.bf16 %v73_v20, %v72_v19  ;;  %v255_v24 = vpack.c.bf16 %v75_v23, %v74_v22  ;;  %v59_v25 = vld [vmem:[#allocation2 + $0x8] sm:$0xff]  ;;  %v173_v26 = vld [vmem:[%s411_s2] ss:$0 sm:$0xff] }
  0x2d   :  { %p316_p6 = pnand %p315_p5, %p309_p2 }
  0x2e   :  { %234 = vmatpush3.bf16.msra.mxu0 %v231_v5 }
  0x2f   :  { %236 = vmatprep.subr.bf16.mxu0 %v235_v8 }
  0x32   :  { %238 = vmatpush3.bf16.msra.mxu0 %v235_v8 }
  0x33   :  { %240 = vmatprep.subr.bf16.mxu0 %v239_v12 }
  0x36   :  { %242 = vmatpush3.bf16.msra.mxu0 %v239_v12 }
  0x37   :  { %244 = vmatprep.subr.bf16.mxu0 %v243_v15 }
  0x3a   :  { %246 = vmatpush3.bf16.msra.mxu0 %v243_v15 }
  0x3b   :  { %248 = vmatprep.subr.bf16.mxu0 %v247_v18 }
  0x3e   :  { %250 = vmatpush3.bf16.msra.mxu0 %v247_v18 }
  0x3f   :  { %252 = vmatprep.subr.bf16.mxu0 %v251_v21 }
  0x42   :  { %254 = vmatpush3.bf16.msra.mxu0 %v251_v21 }
  0x43   :  { %256 = vmatprep.subr.bf16.mxu0 %v255_v24 }
  0x46   :  { %258 = vmatpush3.bf16.msra.mxu0 %v255_v24 }
  0x49   :  { %225 = vmatmul.mubr.f32.vlgmr.msra.gmra.mrb[0].mxu0 %v59_v25 }
 0x11c   :  { %v226_v27 = vpop.f32.mrb[0].mxu0 }
 0x11d   :  { %v152_v28 = vadd.f32 %v226_v27, %v173_v26  ;;  %v142_v29 = vpop.f32.mrb[1].mxu0 }
 0x11e   :  { %v151_v30 = vadd.f32 %v173_v26, %v142_v29 }
 0x11f   :  { %154 = vst [vmem:[#allocation7 + $0x8] sm:$0xff] %v152_v28 }
 0x120   :  { %153 = vst [vmem:[#allocation7] sm:$0xff] %v151_v30 }
 0x121   :  { %319 = shalt.err (!%p316_p6)
}
 0x122   :  { %s320_s2 = scalar_lea.hbm %s412_s3, 256 }
 0x123   :  { %p321_p7 = scmp.ne.s32.totalorder %s412_s3, %s320_s2  ;;  %p324_p8 = scmp.lt.u32.totalorder %s320_s2, %s412_s3 }
 0x125   :  { %p326_p9 = pnand %p324_p8, %p321_p7 }
 0x127   :  { %329 = shalt.err (!%p326_p9)
}
 0x128   :  { %166 = dma.vmem_to_hbm [thread:$0]  %s161_s12, 256, %s412_s3, [#allocation4], %s337_s22, %s337_s22, %s338_s23  }
 0x129   :  { %334 = dma.done.wait [#allocation4], 256  }
 0x12a   :  { %335 = vsyncadd [#allocation4], 4294967040 }
 0x12b   :  { %170 = vsyncpa [#allocation3], 1 }
 0x12c   :  { %171 = vsyncpa [#allocation6], 1 }
 0x12d   :  { %172 = vsyncpa [#allocation4], 1 }

</bundles_post_ra>
